<compile_context>
chip_gen: v5e
topology: v5e:2x2
jax: 0.10.0
libtpu: 0.0.40
codegen_flags: <defaults>
</compile_context>

<pallas_src>
import functools

import numpy as np
import jax
import jax.numpy as jnp
from jax.experimental import pallas as pl
from jax.experimental.pallas import tpu as pltpu


# ---------------------------------------------------------------------------
# Fused matmul Pallas kernel:  out = act(acc * scale + shift) [+ residual]
# ---------------------------------------------------------------------------
def _make_fused_kernel(act, has_residual):
    def kernel(*refs):
        if has_residual:
            a_ref, b_ref, scale_ref, shift_ref, res_ref, o_ref, acc_ref = refs
        else:
            a_ref, b_ref, scale_ref, shift_ref, o_ref, acc_ref = refs

        k = pl.program_id(2)

        @pl.when(k == 0)
        def _():
            acc_ref[...] = jnp.zeros_like(acc_ref)

        acc_ref[...] += jnp.dot(a_ref[...], b_ref[...],
                                preferred_element_type=jnp.float32)

        @pl.when(k == pl.num_programs(2) - 1)
        def _():
            y = acc_ref[...] * scale_ref[...] + shift_ref[...]
            if act == "relu":
                y = jnp.maximum(y, 0.0)
            elif act == "lrelu":
                y = jnp.where(y >= 0.0, y, 0.2 * y)
            elif act == "sigmoid":
                y = 1.0 / (1.0 + jnp.exp(-y))
            if has_residual:
                y = y + res_ref[...].astype(jnp.float32)
            o_ref[...] = y.astype(o_ref.dtype)

    return kernel


def _round_up(x, m):
    return (x + m - 1) // m * m


@functools.lru_cache(maxsize=None)
def _tile_prefs():
    """Per-generation M/N tile preferences (clamped to problem size per call)."""
    tm, tn = 512, 256
    get_info = getattr(pltpu, "get_tpu_info", None)
    if get_info is not None:
        try:
            vmem = getattr(get_info(), "vmem_capacity_bytes", None)
            if vmem is not None and vmem <= 80 * (1 << 20):   # v7x-class (64 MiB/TC)
                tm = 256
        except Exception:
            pass
    return tm, tn


def fused_matmul(a, b, scale=None, shift=None, residual=None, act="none",
                 out_dtype=jnp.bfloat16):
    """A:(M,K) @ B:(K,N) with fused BN-affine(+bias) / activation / residual.

    A and B are cast to bf16 (f32 accumulation on the MXU).  K is processed in a
    single grid step whenever it fits comfortably in VMEM, so the residual is
    only loaded once per output tile.
    """
    M, K = a.shape
    K2, N = b.shape
    assert K == K2

    tm_pref, tn_pref = _tile_prefs()
    tm = min(tm_pref, _round_up(M, 8))
    tn = min(tn_pref, _round_up(N, 128))
    tk = min(2560, _round_up(K, 128))           # single K step for all layers here
    Mp, Kp, Np = _round_up(M, tm), _round_up(K, tk), _round_up(N, tn)

    # Keep >= 2 independent grid points so both TensorCores stay busy (megacore).
    if (Mp // tm) * (Np // tn) == 1:
        if tm % 16 == 0:
            tm //= 2
        elif tn % 256 == 0:
            tn //= 2

    def pad2(x, rp, cp, dtype):
        x = x.astype(dtype)
        if rp == x.shape[0] and cp == x.shape[1]:
            return x
        return jnp.pad(x, ((0, rp - x.shape[0]), (0, cp - x.shape[1])))

    a_p = pad2(a, Mp, Kp, jnp.bfloat16)
    b_p = pad2(b, Kp, Np, jnp.bfloat16)

    scale = jnp.ones((N,), jnp.float32) if scale is None else scale.astype(jnp.float32)
    shift = jnp.zeros((N,), jnp.float32) if shift is None else shift.astype(jnp.float32)
    scale_p = jnp.pad(scale, (0, Np - N)).reshape(1, Np)
    shift_p = jnp.pad(shift, (0, Np - N)).reshape(1, Np)

    in_specs = [
        pl.BlockSpec((tm, tk), lambda i, j, k: (i, k)),
        pl.BlockSpec((tk, tn), lambda i, j, k: (k, j)),
        pl.BlockSpec((1, tn), lambda i, j, k: (0, j)),
        pl.BlockSpec((1, tn), lambda i, j, k: (0, j)),
    ]
    operands = [a_p, b_p, scale_p, shift_p]

    has_res = residual is not None
    if has_res:
        res_p = pad2(residual, Mp, Np, residual.dtype)
        in_specs.append(pl.BlockSpec((tm, tn), lambda i, j, k: (i, j)))
        operands.append(res_p)

    out = pl.pallas_call(
        _make_fused_kernel(act, has_res),
        out_shape=jax.ShapeDtypeStruct((Mp, Np), out_dtype),
        grid_spec=pltpu.PrefetchScalarGridSpec(
            num_scalar_prefetch=0,
            grid=(Mp // tm, Np // tn, Kp // tk),
            in_specs=in_specs,
            out_specs=pl.BlockSpec((tm, tn), lambda i, j, k: (i, j)),
            scratch_shapes=[pltpu.VMEM((tm, tn), jnp.float32)],
        ),
        compiler_params=pltpu.CompilerParams(
            dimension_semantics=("parallel", "parallel", "arbitrary")),
    )(*operands)
    if Mp != M or Np != N:
        out = out[:M, :N]
    return out


# ---------------------------------------------------------------------------
# Conv helpers (im2col glue in plain JAX, matmul hot path in Pallas)
# ---------------------------------------------------------------------------
def _im2col(x, kh, kw):
    """x: (N, H, W, C) already spatially padded -> (N*Ho*Wo, kh*kw*C)."""
    N, H, W, C = x.shape
    Ho, Wo = H - kh + 1, W - kw + 1
    patches = [x[:, i:i + Ho, j:j + Wo, :] for i in range(kh) for j in range(kw)]
    cols = jnp.concatenate(patches, axis=-1)          # (N, Ho, Wo, kh*kw*C)
    return cols.reshape(N * Ho * Wo, kh * kw * C)
# TODO(synk): im2col is still materialized in HBM; fusing the tap loop into the
#             Pallas grid (index_map offsets into the padded NHWC activation)
#             would remove this extra HBM round trip.


def conv2d_3x3(x, w_mat, scale=None, shift=None, act="none", residual=None,
               out_dtype=jnp.bfloat16):
    """3x3 conv, stride 1, pad 1.  x NHWC, w_mat (9*Cin, Cout) matmul-ready."""
    N, H, W, C = x.shape
    Cout = w_mat.shape[1]
    xp = jnp.pad(x, ((0, 0), (1, 1), (1, 1), (0, 0)))
    cols = _im2col(xp, 3, 3)
    out = fused_matmul(cols, w_mat, scale=scale, shift=shift,
                       residual=residual, act=act, out_dtype=out_dtype)
    return out.reshape(N, H, W, Cout)


def conv_transpose2d_k4s2p1(x, phase_mats, scale=None, shift=None, act="none"):
    """ConvTranspose2d(k=4, s=2, p=1) via 4 sub-pixel-phase 2x2 convolutions.

    out[n, 2m+py, 2q+px, :] = sum_{dy,dx} xpad[n, m+py+dy, q+px+dx, :] @ Wphase[dy,dx]
    with xpad = pad(x, 1).  Avoids the zero-dilated im2col (4x fewer MXU FLOPs).
    """
    N, H, W, C = x.shape
    Cout = phase_mats[0].shape[1]
    xp = jnp.pad(x, ((0, 0), (1, 1), (1, 1), (0, 0)))      # (N, H+2, W+2, C)
    rows = []
    for py in (0, 1):
        cols_out = []
        for px in (0, 1):
            sub = xp[:, py:py + H + 1, px:px + W + 1, :]   # (N, H+1, W+1, C)
            cols = _im2col(sub, 2, 2)                      # (N*H*W, 4*C)
            o = fused_matmul(cols, phase_mats[2 * py + px],
                             scale=scale, shift=shift, act=act)
            cols_out.append(o.reshape(N, H, W, Cout))
        rows.append(jnp.stack(cols_out, axis=0))           # (2, N, H, W, Cout)
    st = jnp.stack(rows, axis=0)                            # (py, px, N, H, W, Cout)
    return st.transpose(2, 3, 0, 4, 1, 5).reshape(N, 2 * H, 2 * W, Cout)


@functools.lru_cache(maxsize=None)
def _interp_matrix(n_in, n_out):
    """Bilinear (align_corners=True) interpolation matrix (n_out, n_in)."""
    A = np.zeros((n_out, n_in), np.float32)
    if n_in == 1:
        A[:, 0] = 1.0
    else:
        for i in range(n_out):
            pos = i * (n_in - 1) / (n_out - 1)
            lo = int(np.floor(pos))
            hi = min(lo + 1, n_in - 1)
            frac = pos - lo
            A[i, lo] += 1.0 - frac
            A[i, hi] += frac
    return jnp.asarray(A)


def bilinear_upsample_4x(x):
    """nn.Upsample(scale_factor=4, mode='bilinear', align_corners=True) on NHWC,
    as two separable 1D interpolation matmuls (rows then columns)."""
    N, H, W, C = x.shape
    Ho, Wo = 4 * H, 4 * W
    Ar = _interp_matrix(H, Ho)                              # (Ho, H)
    Ac = _interp_matrix(W, Wo)                              # (Wo, W)
    y = fused_matmul(Ar, x.transpose(1, 0, 2, 3).reshape(H, N * W * C))
    y = y.reshape(Ho, N, W, C).transpose(1, 0, 2, 3)        # (N, Ho, W, C)
    z = fused_matmul(Ac, y.transpose(2, 0, 1, 3).reshape(W, N * Ho * C))
    return z.reshape(Wo, N, Ho, C).transpose(1, 2, 0, 3)    # (N, Ho, Wo, C)


# ---------------------------------------------------------------------------
# Deterministic parameter init (synthetic weights, matmul-ready layout)
# ---------------------------------------------------------------------------
_rng = np.random.default_rng(0)
_BN_EPS = 1e-5


def _spectral_normalize(w, dim=0):
    mat = np.moveaxis(w, dim, 0).reshape(w.shape[dim], -1).astype(np.float64)
    v = np.ones(mat.shape[1]) / np.sqrt(mat.shape[1])
    for _ in range(20):
        u = mat @ v
        u /= (np.linalg.norm(u) + 1e-12)
        v = mat.T @ u
        v /= (np.linalg.norm(v) + 1e-12)
    sigma = float(u @ mat @ v)
    return (w / max(sigma, 1e-12)).astype(np.float32)


def _gen_linear(cout, cin):
    w = _rng.normal(0.0, 0.1, (cout, cin)).astype(np.float32)
    b = _rng.normal(0.0, 0.05, (cout,)).astype(np.float32)
    return w, b


def _gen_conv(cout, cin, kh, kw, sn=True):
    w = _rng.normal(0.0, 0.1, (cout, cin, kh, kw)).astype(np.float32)
    if sn:
        w = _spectral_normalize(w, dim=0)
    b = _rng.normal(0.0, 0.05, (cout,)).astype(np.float32)
    return w, b


def _gen_convT(cin, cout, kh, kw):
    w = _rng.normal(0.0, 0.1, (cin, cout, kh, kw)).astype(np.float32)
    w = _spectral_normalize(w, dim=1)                      # torch default for ConvT
    b = _rng.normal(0.0, 0.05, (cout,)).astype(np.float32)
    return w, b


def _init_bn(c):
    gamma = _rng.normal(1.0, 0.05, (c,)).astype(np.float32)
    beta = _rng.normal(0.0, 0.05, (c,)).astype(np.float32)
    # running_mean = 0, running_var = 1 (fresh module, eval mode) folded in.
    scale = gamma / np.sqrt(1.0 + _BN_EPS)
    shift = beta
    return scale, shift


def _fold_affine(bias, bn=None):
    """Fold conv/linear bias through the BN affine:  y = scale*acc + shift."""
    if bn is None:
        return None, jnp.asarray(bias)
    scale, shift = bn
    return jnp.asarray(scale), jnp.asarray(bias * scale + shift)


def _prep_conv3x3(w):            # (Cout, Cin, 3, 3) -> (9*Cin, Cout) bf16
    return jnp.asarray(np.transpose(w, (2, 3, 1, 0)).reshape(-1, w.shape[0]),
                       dtype=jnp.bfloat16)


def _prep_conv1x1(w):            # (Cout, Cin, 1, 1) -> (Cin, Cout) bf16
    return jnp.asarray(w[:, :, 0, 0].T, dtype=jnp.bfloat16)


_PHASE_TAPS = {0: (3, 1), 1: (2, 0)}   # kernel taps per output phase (even / odd)


def _prep_convT_phases(w):       # (Cin, Cout, 4, 4) -> 4 x (4*Cin, Cout) bf16
    mats = []
    for py in (0, 1):
        for px in (0, 1):
            blocks = [w[:, :, _PHASE_TAPS[py][dy], _PHASE_TAPS[px][dx]]
                      for dy in (0, 1) for dx in (0, 1)]
            mats.append(jnp.asarray(np.concatenate(blocks, axis=0),
                                    dtype=jnp.bfloat16))
    return mats


def _init_block(cin, cout):
    p = {}
    ct1_w, ct1_b = _gen_convT(cin, cout, 4, 4)
    p["ct1_mats"] = _prep_convT_phases(ct1_w)
    p["ct1_scale"], p["ct1_shift"] = _fold_affine(ct1_b, _init_bn(cout))
    c1_w, c1_b = _gen_conv(cout, cout, 3, 3)
    p["c1_mat"] = _prep_conv3x3(c1_w)
    p["c1_scale"], p["c1_shift"] = _fold_affine(c1_b, _init_bn(cout))
    ct2_w, ct2_b = _gen_convT(cout, cout, 4, 4)
    p["ct2_mats"] = _prep_convT_phases(ct2_w)
    p["ct2_scale"], p["ct2_shift"] = _fold_affine(ct2_b, _init_bn(cout))
    c2_w, c2_b = _gen_conv(cout, cout, 3, 3)
    p["c2_mat"] = _prep_conv3x3(c2_w)
    p["c2_scale"], p["c2_shift"] = _fold_affine(c2_b, _init_bn(cout))
    skip_w, skip_b = _gen_conv(cout, cin, 1, 1)
    p["skip_mat"] = _prep_conv1x1(skip_w)
    _, p["skip_shift"] = _fold_affine(skip_b, None)
    return p


def init_params(latent_dim, img_size):
    d = 2 * img_size // 128
    c0 = 256
    params = {"dim_after_conv": d, "start_channels": c0}
    fc1_w, fc1_b = _gen_linear(img_size, latent_dim)
    params["fc1_mat"] = jnp.asarray(fc1_w.T, dtype=jnp.bfloat16)
    params["fc1_scale"], params["fc1_shift"] = _fold_affine(fc1_b, _init_bn(img_size))
    fc2_w, fc2_b = _gen_linear(c0 * d * d, img_size)
    params["fc2_mat"] = jnp.asarray(fc2_w.T, dtype=jnp.bfloat16)
    _, params["fc2_shift"] = _fold_affine(fc2_b, None)
    params["blocks"] = [
        _init_block(c0, c0),
        _init_block(c0, c0 // 2),
        _init_block(c0 // 2, c0 // 4),
    ]
    fin_w, fin_b = _gen_conv(1, c0 // 4, 3, 3, sn=False)
    params["final_mat"] = _prep_conv3x3(fin_w)
    _, params["final_shift"] = _fold_affine(fin_b, None)
    return params


# ---------------------------------------------------------------------------
# Forward pass
# ---------------------------------------------------------------------------
def conv_residual_block(x, p):
    # skip path: 1x1 conv at the block's INPUT resolution, then bilinear x4
    # upsample.  (Exact: align_corners bilinear weights sum to 1 per output
    # pixel, so Upsample(Conv1x1(x)) == Conv1x1(Upsample(x)) incl. the bias,
    # but the conv runs on 1/16 of the pixels.)
    N, H, W, Cin = x.shape
    idn = fused_matmul(x.reshape(N * H * W, Cin), p["skip_mat"],
                       shift=p["skip_shift"])
    idn = bilinear_upsample_4x(idn.reshape(N, H, W, -1))    # (N, 4H, 4W, Cout)
    Cout = idn.shape[-1]
    idn_flat = idn.reshape(N * 4 * H * 4 * W, Cout)

    # upsample1: ConvT + BN + LeakyReLU + Conv3x3 + BN + LeakyReLU
    h = conv_transpose2d_k4s2p1(x, p["ct1_mats"],
                                scale=p["ct1_scale"], shift=p["ct1_shift"], act="lrelu")
    h = conv2d_3x3(h, p["c1_mat"],
                   scale=p["c1_scale"], shift=p["c1_shift"], act="lrelu")
    # upsample2 (residual add fused into the epilogue of the block's last conv)
    h = conv_transpose2d_k4s2p1(h, p["ct2_mats"],
                                scale=p["ct2_scale"], shift=p["ct2_shift"], act="lrelu")
    h = conv2d_3x3(h, p["c2_mat"],
                   scale=p["c2_scale"], shift=p["c2_shift"], act="lrelu",
                   residual=idn_flat)
    return h                                                # (N, 4H, 4W, Cout)


def clock_decoder_forward(x, params):
    """x: (B, latent_dim) -> (B, 1, img_size, img_size)  (NCHW, like PyTorch)."""
    B = x.shape[0]
    d = params["dim_after_conv"]
    c0 = params["start_channels"]

    # decoder_fc: Linear + BN1d + ReLU + Linear + ReLU + Unflatten
    h = fused_matmul(x, params["fc1_mat"],
                     scale=params["fc1_scale"], shift=params["fc1_shift"], act="relu")
    h = fused_matmul(h, params["fc2_mat"], shift=params["fc2_shift"], act="relu")
    h = h.reshape(B, c0, d, d).transpose(0, 2, 3, 1)        # NCHW unflatten -> NHWC

    # decoder_conv: 3 residual blocks + final 3x3 conv + Sigmoid
    for p in params["blocks"]:
        h = conv_residual_block(h, p)
    # TODO(synk): the 1-output-channel final conv still runs as an MXU matmul
    #             with N padded 1->128; a VPU K-reduction would avoid the pad.
    h = conv2d_3x3(h, params["final_mat"], shift=params["final_shift"],
                   act="sigmoid", out_dtype=jnp.float32)

    return h.transpose(0, 3, 1, 2)                          # back to NCHW


# ---------------------------------------------------------------------------
if __name__ == "__main__":
    latent_dim, img_size, batch = 2, 64, 2
    params = init_params(latent_dim, img_size)

    key = jax.random.PRNGKey(0)
    x = jax.random.normal(key, (batch, latent_dim), dtype=jnp.float32)

    out = clock_decoder_forward(x, params)
    out = jax.block_until_ready(out)

    assert out.shape == (batch, 1, img_size, img_size), out.shape
    assert bool(jnp.all(jnp.isfinite(out)))
    assert bool(jnp.all((out >= 0.0) & (out <= 1.0)))       # sigmoid range
    print("KERNEL_OK")
</pallas_src>

<mosaic_0001>
module attributes {stable_mosaic.version = 11 : i64} {
  func.func @kernel(%arg0: i32, %arg1: i32, %arg2: i32, %arg3: memref<8x128xbf16, #tpu.memory_space<vmem>>, %arg4: memref<128x128xbf16, #tpu.memory_space<vmem>>, %arg5: memref<1x128xf32, #tpu.memory_space<vmem>>, %arg6: memref<1x128xf32, #tpu.memory_space<vmem>>, %arg7: memref<8x128xbf16, #tpu.memory_space<vmem>>, %arg8: memref<8x128xf32, #tpu.memory_space<vmem>>) attributes {dimension_semantics = [#tpu.dimension_semantics<parallel>, #tpu.dimension_semantics<parallel>, #tpu.dimension_semantics<arbitrary>], iteration_bounds = array<i64: 1, 1, 1>, scalar_prefetch = 0 : i64, scratch_operands = 1 : i64, tpu.core_type = #tpu.core_type<tc>, window_params = [{transform_indices = @transform_0, window_bounds = array<i64: 8, 128>}, {transform_indices = @transform_1, window_bounds = array<i64: 128, 128>}, {transform_indices = @transform_2, window_bounds = array<i64: 1, 128>}, {transform_indices = @transform_3, window_bounds = array<i64: 1, 128>}, {transform_indices = @transform_4, window_bounds = array<i64: 8, 128>}]} {
    %c0_i32 = arith.constant 0 : i32
    %0 = arith.cmpi eq, %arg2, %c0_i32 : i32
    %1 = arith.extui %0 : i1 to i32
    %c0_i32_0 = arith.constant 0 : i32
    %2 = arith.cmpi ne, %1, %c0_i32_0 : i32
    scf.if %2 {
      %cst_10 = arith.constant 0.000000e+00 : f32
      %12 = vector.broadcast %cst_10 : f32 to vector<8x128xf32>
      %c0_11 = arith.constant 0 : index
      %c0_12 = arith.constant 0 : index
      %13 = vector.load %arg8[%c0_11, %c0_12] : memref<8x128xf32, #tpu.memory_space<vmem>>, vector<8x128xf32>
      tpu.vector_store %arg8[%c0_11, %c0_12], %12 {strides = array<i32>} : memref<8x128xf32, #tpu.memory_space<vmem>>, vector<8x128xf32>,
    } else {
    }
    %c0 = arith.constant 0 : index
    %c0_1 = arith.constant 0 : index
    %3 = vector.load %arg8[%c0, %c0_1] : memref<8x128xf32, #tpu.memory_space<vmem>>, vector<8x128xf32>
    %c0_2 = arith.constant 0 : index
    %c0_3 = arith.constant 0 : index
    %4 = vector.load %arg3[%c0_2, %c0_3] : memref<8x128xbf16, #tpu.memory_space<vmem>>, vector<8x128xbf16>
    %c0_4 = arith.constant 0 : index
    %c0_5 = arith.constant 0 : index
    %5 = vector.load %arg4[%c0_4, %c0_5] : memref<128x128xbf16, #tpu.memory_space<vmem>>, vector<128x128xbf16>
    %cst = arith.constant dense<0.000000e+00> : vector<8x128xf32>
    %6 = tpu.matmul %4, %5, %cst {dimension_numbers = #tpu.dot_dimension_numbers<[1], [0], [0], [1], [0, 0, 1, 1], [], []>} : vector<8x128xbf16>, vector<128x128xbf16>, vector<8x128xf32> -> vector<8x128xf32>
    %7 = arith.addf %3, %6 : vector<8x128xf32>
    %c0_6 = arith.constant 0 : index
    %c0_7 = arith.constant 0 : index
    %8 = vector.load %arg8[%c0_6, %c0_7] : memref<8x128xf32, #tpu.memory_space<vmem>>, vector<8x128xf32>
    tpu.vector_store %arg8[%c0_6, %c0_7], %7 {strides = array<i32>} : memref<8x128xf32, #tpu.memory_space<vmem>>, vector<8x128xf32>,
    %c0_i32_8 = arith.constant 0 : i32
    %9 = arith.cmpi eq, %arg2, %c0_i32_8 : i32
    %10 = arith.extui %9 : i1 to i32
    %c0_i32_9 = arith.constant 0 : i32
    %11 = arith.cmpi ne, %10, %c0_i32_9 : i32
    scf.if %11 {
      %c0_10 = arith.constant 0 : index
      %c0_11 = arith.constant 0 : index
      %12 = vector.load %arg8[%c0_10, %c0_11] : memref<8x128xf32, #tpu.memory_space<vmem>>, vector<8x128xf32>
      %c0_12 = arith.constant 0 : index
      %c0_13 = arith.constant 0 : index
      %13 = vector.load %arg5[%c0_12, %c0_13] : memref<1x128xf32, #tpu.memory_space<vmem>>, vector<1x128xf32>
      %14 = vector.broadcast %13 : vector<1x128xf32> to vector<8x128xf32>
      %15 = arith.mulf %12, %14 : vector<8x128xf32>
      %c0_14 = arith.constant 0 : index
      %c0_15 = arith.constant 0 : index
      %16 = vector.load %arg6[%c0_14, %c0_15] : memref<1x128xf32, #tpu.memory_space<vmem>>, vector<1x128xf32>
      %17 = vector.broadcast %16 : vector<1x128xf32> to vector<8x128xf32>
      %18 = arith.addf %15, %17 : vector<8x128xf32>
      %cst_16 = arith.constant 0.000000e+00 : f32
      %19 = vector.broadcast %cst_16 : f32 to vector<8x128xf32>
      %20 = arith.maximumf %18, %19 : vector<8x128xf32>
      %21 = arith.truncf %20 : vector<8x128xf32> to vector<8x128xbf16>
      %c0_17 = arith.constant 0 : index
      %c0_18 = arith.constant 0 : index
      %22 = vector.load %arg7[%c0_17, %c0_18] : memref<8x128xbf16, #tpu.memory_space<vmem>>, vector<8x128xbf16>
      tpu.vector_store %arg7[%c0_17, %c0_18], %21 {strides = array<i32>} : memref<8x128xbf16, #tpu.memory_space<vmem>>, vector<8x128xbf16>,
    } else {
    }
    return
  }
  func.func @transform_0(%arg0: i32, %arg1: i32, %arg2: i32) -> (i32, i32) {
    %c0_i32 = arith.constant 0 : i32
    return %arg0, %arg2 : i32, i32
  }
  func.func @transform_1(%arg0: i32, %arg1: i32, %arg2: i32) -> (i32, i32) {
    %c0_i32 = arith.constant 0 : i32
    return %arg2, %arg1 : i32, i32
  }
  func.func @transform_2(%arg0: i32, %arg1: i32, %arg2: i32) -> (i32, i32) {
    %c0_i32 = arith.constant 0 : i32
    %c0_i32_0 = arith.constant 0 : i32
    return %c0_i32, %arg1 : i32, i32
  }
  func.func @transform_3(%arg0: i32, %arg1: i32, %arg2: i32) -> (i32, i32) {
    %c0_i32 = arith.constant 0 : i32
    %c0_i32_0 = arith.constant 0 : i32
    return %c0_i32, %arg1 : i32, i32
  }
  func.func @transform_4(%arg0: i32, %arg1: i32, %arg2: i32) -> (i32, i32) {
    %c0_i32 = arith.constant 0 : i32
    return %arg0, %arg1 : i32, i32
  }
}

</mosaic_0001>

<bundles_post_ra>
// kernel: tpu_custom_call.1
= control target key start
LH: loop header
LB: loop body
LE: loop exit
PB: predicated region body
PF: predicated region fallthrough
CT: control target
= control target key end

     0   :  { %9 = vsyncpa [#allocation4], 0  ;;  %s339_s0 = inlined_call_operand.hbm [shape: bf16[8,128], index: 0, kind: input, shape index: {}]   ;;  %s340_s1 = inlined_call_operand.hbm [shape: bf16[128,128], index: 1, kind: input, shape index: {}]   ;;  %s341_s2 = inlined_call_operand.vmem [shape: f32[1,128], index: 2, kind: input, shape index: {}]   ;;  %s342_s3 = inlined_call_operand.vmem [shape: f32[1,128], index: 3, kind: input, shape index: {}]   ;;  %s343_s4 = inlined_call_operand.hbm [shape: bf16[8,128], index: 4, kind: output, shape index: {}]  }
   0x1   :  { %10 = vsyncpa [#allocation7], 0 }
   0x2   :  { %11 = vsyncpa [#allocation5], 0  ;;  %s17_s17 = sshll.u32 %s339_s0, 4  ;;  %s294_s18 = smov [#allocation3]   ;;  %s18_s17 = int_to_ptr.hbm [resolvable:$true] %s17_s17 }
   0x3   :  { %s19_s19 = sshll.u32 %s294_s18, 4  ;;  %s27_s22 = sshll.u32 %s340_s1, 4  ;;  %s20_s19 = int_to_ptr.vmem [resolvable:$true] %s19_s19  ;;  %s28_s22 = int_to_ptr.hbm [resolvable:$true] %s27_s22 }
   0x4   :  { %22 = dma.hbm_to_vmem [thread:$0]  %s18_s17, 64, %s20_s19, [#allocation4]  }
   0x5   :  { %s295_s23 = smov [#allocation6]   ;;  %s296_s25 = smov 64  }
   0x6   :  { %s29_s24 = sshll.u32 %s295_s23, 4  ;;  %s297_s26 = smov 4   ;;  %s30_s24 = int_to_ptr.vmem [resolvable:$true] %s29_s24 }
   0x7   :  { %35 = dma.hbm_to_vmem [thread:$0]  %s28_s22, 1024, %s30_s24, [#allocation7], %s296_s25, %s296_s25, %s297_s26  }
   0x8   :  { %288 = dma.done.wait [#allocation4], 64  }
   0x9   :  { %289 = vsyncadd [#allocation4], 4294967232 }
   0xa   :  { %290 = dma.done.wait [#allocation7], 1024  }
   0xb   :  { %291 = vsyncadd [#allocation7], 4294966272  ;;  %v208_v0 = vld [vmem:[#allocation6 + $0x38] sm:$0xff]  ;;  %v207_v1 = vld [vmem:[#allocation6 + $0x30] sm:$0xff]  ;;  %s298_s29 = smov [#allocation8]   ;;  %s158_s7 = sshll.u32 %s343_s4, 4  ;;  %s159_s7 = int_to_ptr.hbm [resolvable:$true] %s158_s7 }
   0xc   :  { %119 = vmatpush.bf16.msra.mxu0 %v208_v0  ;;  %v206_v2 = vld [vmem:[#allocation6 + $0x28] sm:$0xff]  ;;  %v205_v3 = vld [vmem:[#allocation6 + $0x20] sm:$0xff]  ;;  %v204_v4 = vld [vmem:[#allocation6 + $0x18] sm:$0xff]  ;;  %s156_s30 = sshll.u32 %s298_s29, 4  ;;  %s157_s30 = int_to_ptr.vmem [resolvable:$true] %s156_s30 }
   0xd   :  { %v203_v5 = vld [vmem:[#allocation6 + $0x10] sm:$0xff]  ;;  %v202_v6 = vld [vmem:[#allocation6 + $0x8] sm:$0xff]  ;;  %v201_v7 = vld [vmem:[#allocation6] sm:$0xff] }
   0xe   :  { %v54_v8 = vld [vmem:[#allocation3] sm:$0xf] }
   0xf   :  { %v214_v9 = vld [vmem:[%s341_s2] ss:$0 sm:$0xff] }
  0x10   :  { %120 = vmatpush.bf16.msra.mxu0 %v207_v1  ;;  %v215_v10 = vld [vmem:[%s342_s3] ss:$0 sm:$0xff] }
  0x14   :  { %121 = vmatpush.bf16.msra.mxu0 %v206_v2 }
  0x18   :  { %122 = vmatpush.bf16.msra.mxu0 %v205_v3 }
  0x1c   :  { %123 = vmatpush.bf16.msra.mxu0 %v204_v4 }
  0x20   :  { %124 = vmatpush.bf16.msra.mxu0 %v203_v5 }
  0x24   :  { %125 = vmatpush.bf16.msra.mxu0 %v202_v6 }
  0x28   :  { %126 = vmatpush.bf16.msra.mxu0 %v201_v7 }
  0x2b   :  { %127 = vmatmul.bf16.vlgmr.msra.gmra.mxu0 %v54_v8 }
  0xa8   :  { %v128_v11 = vpop.f32.mrf.mxu0 }
  0xa9   :  { %v142_v12 = vmul.f32 %v214_v9, %v128_v11 }
  0xab   :  { %v147_v13 = vadd.f32 %v215_v10, %v142_v12 }
  0xad   :  { %v148_v14 = vmax.f32 %v147_v13, 0.0 }
  0xaf   :  { %v149_v15 = vpack.c.bf16 %v148_v14, %v148_v14 }
  0xb0   :  { %v130_v16 = vpop.f32.mrf.mxu0 }
  0xb1   :  { %150 = vst [vmem:[#allocation8] sm:$0xf] %v149_v15 }
  0xb2   :  { %161 = dma.vmem_to_hbm [thread:$0]  %s157_s30, 64, %s159_s7, [#allocation5]  }
  0xb3   :  { %292 = dma.done.wait [#allocation5], 64  }
  0xb4   :  { %293 = vsyncadd [#allocation5], 4294967232 }
  0xb5   :  { %166 = vsyncpa [#allocation4], 1 }
  0xb6   :  { %167 = vsyncpa [#allocation7], 1 }
  0xb7   :  { %168 = vsyncpa [#allocation5], 1 }

</bundles_post_ra>
